<compile_context>
chip_gen: v7x
topology: tpu7x:2x2x1
jax: 0.10.0
libtpu: 0.0.40
codegen_flags: <defaults>
</compile_context>

<pallas_src>
import functools

import jax
import jax.numpy as jnp
from jax.experimental import pallas as pl
from jax.experimental.pallas import tpu as pltpu

LANE = 128      # vreg lane width (last-dim granule)
SUBLANE = 8     # vreg sublane count for fp32 (second-to-last-dim granule)


def _round_up(x, m):
    return ((x + m - 1) // m) * m


def decoder_kernel(zT_ref, yT_ref, w1zT_ref, w1yT_ref, b1T_ref, w2T_ref, b2T_ref,
                   outT_ref):
    """One batch tile, transposed layout (batch on lanes).

        hT   = relu(W1z^T @ z^T + W1y^T @ y^T + b1)     -> (hid_p, TB)
        outT = W2^T @ hT + b2                            -> (out_p, TB)
    """
    h = jnp.dot(w1zT_ref[...], zT_ref[...], preferred_element_type=jnp.float32)
    h = h + jnp.dot(w1yT_ref[...], yT_ref[...], preferred_element_type=jnp.float32)
    h = jnp.maximum(h + b1T_ref[...], 0.0)              # bias broadcast along lanes
    out = jnp.dot(w2T_ref[...], h, preferred_element_type=jnp.float32) + b2T_ref[...]
    outT_ref[...] = out.astype(outT_ref.dtype)


def init_linear(key, in_features, out_features):
    """Deterministic init mimicking torch.nn.Linear (uniform +-1/sqrt(fan_in)).

    Weight is returned as (in_features, out_features) so `x @ W + b` matches torch.
    """
    kw, kb = jax.random.split(key)
    bound = 1.0 / jnp.sqrt(jnp.float32(in_features))
    w = jax.random.uniform(kw, (in_features, out_features), jnp.float32, -bound, bound)
    b = jax.random.uniform(kb, (out_features,), jnp.float32, -bound, bound)
    return w, b


def make_decoder_params(key, latent_dim, hidden_dim, output_dim, num_classes):
    k1, k2 = jax.random.split(key)
    w1, b1 = init_linear(k1, latent_dim + num_classes, hidden_dim)  # fc1
    w2, b2 = init_linear(k2, hidden_dim, output_dim)                # fc2
    return dict(w1=w1, b1=b1, w2=w2, b2=b2)


def _batch_tiling(batch, block_batch):
    """Pick the lane-axis (batch) tile size.  Returns (tile, padded_batch)."""
    block_batch = _round_up(max(int(block_batch), LANE), LANE)   # enforce 128-multiple
    batch_l = _round_up(batch, LANE)                             # lane-align batch
    if batch_l >= 2 * LANE:
        # Aim for >= 2 grid steps so the "parallel" axis can feed both v7x TensorCores.
        tb = min(block_batch, max(LANE, _round_up(batch_l // 2, LANE)))
    else:
        tb = batch_l
    return tb, _round_up(batch_l, tb)


@functools.partial(jax.jit, static_argnames=("block_batch",))
def decoder_forward(z, class_labels, params, *, block_batch=512):
    batch, latent_dim = z.shape
    num_classes = class_labels.shape[-1]
    w1, b1, w2, b2 = params["w1"], params["b1"], params["w2"], params["b2"]
    hidden_dim = w1.shape[1]
    output_dim = w2.shape[1]

    # In the transposed layout feature axes only need sublane (8) padding.
    lat_p = _round_up(latent_dim, SUBLANE)
    cls_p = _round_up(num_classes, SUBLANE)
    hid_p = _round_up(hidden_dim, SUBLANE)
    out_p = _round_up(output_dim, SUBLANE)

    tb, batch_p = _batch_tiling(batch, block_batch)
    grid = (batch_p // tb,)

    # Streamed activations: batch on the lane axis; no 128-wide feature padding and no
    # materialized concat -- z / class_labels ship essentially as-is.
    zT = jnp.pad(z.T, ((0, lat_p - latent_dim), (0, batch_p - batch)))
    yT = jnp.pad(class_labels.T, ((0, cls_p - num_classes), (0, batch_p - batch)))

    # Resident weights (a few KiB total): fc1 rows split into z-rows / class-rows and
    # transposed so the kernel runs plain W^T @ x^T.  Zero padding contributes exactly 0.
    w1zT = jnp.pad(w1[:latent_dim].T, ((0, hid_p - hidden_dim), (0, lat_p - latent_dim)))
    w1yT = jnp.pad(w1[latent_dim:].T, ((0, hid_p - hidden_dim), (0, cls_p - num_classes)))
    b1T = jnp.pad(b1, (0, hid_p - hidden_dim)).reshape(hid_p, 1)
    w2T = jnp.pad(w2.T, ((0, out_p - output_dim), (0, hid_p - hidden_dim)))
    b2T = jnp.pad(b2, (0, out_p - output_dim)).reshape(out_p, 1)

    stream = lambda rows: pl.BlockSpec((rows, tb), lambda i: (0, i))      # batch tiles
    resident = lambda shape: pl.BlockSpec(shape, lambda i: (0, 0))        # stays in VMEM

    weight_bytes = 4 * (hid_p * lat_p + hid_p * cls_p + hid_p + out_p * hid_p + out_p)
    cost = pl.CostEstimate(
        flops=2 * batch_p * (hid_p * (lat_p + cls_p) + out_p * hid_p),
        transcendentals=0,
        bytes_accessed=4 * batch_p * (lat_p + cls_p + out_p) + weight_bytes,
    )

    outT = pl.pallas_call(
        decoder_kernel,
        out_shape=jax.ShapeDtypeStruct((out_p, batch_p), jnp.float32),
        grid=grid,
        in_specs=[
            stream(lat_p),                 # z^T      (streamed)
            stream(cls_p),                 # y^T      (streamed)
            resident((hid_p, lat_p)),      # W1[z]^T  (resident)
            resident((hid_p, cls_p)),      # W1[y]^T  (resident)
            resident((hid_p, 1)),          # b1       (resident)
            resident((out_p, hid_p)),      # W2^T     (resident)
            resident((out_p, 1)),          # b2       (resident)
        ],
        out_specs=pl.BlockSpec((out_p, tb), lambda i: (0, i)),   # lane-dense stores
        compiler_params=pltpu.CompilerParams(
            dimension_semantics=("parallel",),   # batch tiles shard across TCs (v7x)
            vmem_limit_bytes=32 * 1024 * 1024,
        ),
        cost_estimate=cost,
    )(zT, yT, w1zT, w1yT, b1T, w2T, b2T)

    # Strip padding and return to the module's (batch, output_dim) orientation.
    return outT[:output_dim, :batch].T


def decoder_reference(z, class_labels, params):
    """Pure-JAX reference matching the PyTorch Decoder.forward semantics."""
    zy = jnp.concatenate([z, class_labels], axis=-1)
    h = jnp.maximum(
        jnp.dot(zy, params["w1"], precision=jax.lax.Precision.HIGHEST) + params["b1"],
        0.0)
    return jnp.dot(h, params["w2"], precision=jax.lax.Precision.HIGHEST) + params["b2"]


def _check(batch, latent_dim, hidden_dim, output_dim, num_classes, params, seed):
    kz, ky = jax.random.split(jax.random.PRNGKey(seed))
    z = jax.random.normal(kz, (batch, latent_dim), jnp.float32)
    labels_idx = jax.random.randint(ky, (batch,), 0, num_classes)
    class_labels = jax.nn.one_hot(labels_idx, num_classes, dtype=jnp.float32)

    out = decoder_forward(z, class_labels, params)
    jax.block_until_ready(out)

    out_ref = decoder_reference(z, class_labels, params)
    assert out.shape == (batch, output_dim)
    assert bool(jnp.allclose(out, out_ref, atol=1e-4, rtol=1e-4)), (
        f"mismatch at batch={batch}: max_err={float(jnp.max(jnp.abs(out - out_ref)))}")


if __name__ == "__main__":
    # Small shapes consistent with the module's forward.
    latent_dim = 8
    hidden_dim = 32
    output_dim = 16
    num_classes = 4

    key = jax.random.PRNGKey(0)
    k_params, _ = jax.random.split(key)
    params = make_decoder_params(k_params, latent_dim, hidden_dim, output_dim,
                                 num_classes)

    # Single-tile path (tiny batch) ...
    _check(8, latent_dim, hidden_dim, output_dim, num_classes, params, seed=1)
    # ... and the multi-step (padded, 2-grid-step) path.
    _check(300, latent_dim, hidden_dim, output_dim, num_classes, params, seed=2)

    print("KERNEL_OK")
</pallas_src>

<mosaic_0001>
module attributes {stable_mosaic.version = 11 : i64} {
  func.func @decoder_kernel(%arg0: i32, %arg1: memref<8x128xf32, #tpu.memory_space<vmem>>, %arg2: memref<8x128xf32, #tpu.memory_space<vmem>>, %arg3: memref<32x8xf32, #tpu.memory_space<vmem>>, %arg4: memref<32x8xf32, #tpu.memory_space<vmem>>, %arg5: memref<32x1xf32, #tpu.memory_space<vmem>>, %arg6: memref<16x32xf32, #tpu.memory_space<vmem>>, %arg7: memref<16x1xf32, #tpu.memory_space<vmem>>, %arg8: memref<16x128xf32, #tpu.memory_space<vmem>>) attributes {dimension_semantics = [#tpu.dimension_semantics<parallel>], iteration_bounds = array<i64: 1>, scalar_prefetch = 0 : i64, scratch_operands = 0 : i64, tpu.core_type = #tpu.core_type<tc>, window_params = [{transform_indices = @transform_0, window_bounds = array<i64: 8, 128>}, {transform_indices = @transform_1, window_bounds = array<i64: 8, 128>}, {pipeline_mode = #tpu.pipeline_mode<synchronous>, transform_indices = @transform_2, window_bounds = array<i64: 32, 8>}, {pipeline_mode = #tpu.pipeline_mode<synchronous>, transform_indices = @transform_3, window_bounds = array<i64: 32, 8>}, {pipeline_mode = #tpu.pipeline_mode<synchronous>, transform_indices = @transform_4, window_bounds = array<i64: 32, 1>}, {pipeline_mode = #tpu.pipeline_mode<synchronous>, transform_indices = @transform_5, window_bounds = array<i64: 16, 32>}, {pipeline_mode = #tpu.pipeline_mode<synchronous>, transform_indices = @transform_6, window_bounds = array<i64: 16, 1>}, {transform_indices = @transform_7, window_bounds = array<i64: 16, 128>}]} {
    %c0 = arith.constant 0 : index
    %c0_0 = arith.constant 0 : index
    %0 = vector.load %arg3[%c0, %c0_0] : memref<32x8xf32, #tpu.memory_space<vmem>>, vector<32x8xf32>
    %c0_1 = arith.constant 0 : index
    %c0_2 = arith.constant 0 : index
    %1 = vector.load %arg1[%c0_1, %c0_2] : memref<8x128xf32, #tpu.memory_space<vmem>>, vector<8x128xf32>
    %cst = arith.constant dense<0.000000e+00> : vector<32x128xf32>
    %2 = tpu.matmul %0, %1, %cst {dimension_numbers = #tpu.dot_dimension_numbers<[1], [0], [0], [1], [0, 0, 1, 1], [], []>} : vector<32x8xf32>, vector<8x128xf32>, vector<32x128xf32> -> vector<32x128xf32>
    %c0_3 = arith.constant 0 : index
    %c0_4 = arith.constant 0 : index
    %3 = vector.load %arg4[%c0_3, %c0_4] : memref<32x8xf32, #tpu.memory_space<vmem>>, vector<32x8xf32>
    %c0_5 = arith.constant 0 : index
    %c0_6 = arith.constant 0 : index
    %4 = vector.load %arg2[%c0_5, %c0_6] : memref<8x128xf32, #tpu.memory_space<vmem>>, vector<8x128xf32>
    %cst_7 = arith.constant dense<0.000000e+00> : vector<32x128xf32>
    %5 = tpu.matmul %3, %4, %cst_7 {dimension_numbers = #tpu.dot_dimension_numbers<[1], [0], [0], [1], [0, 0, 1, 1], [], []>} : vector<32x8xf32>, vector<8x128xf32>, vector<32x128xf32> -> vector<32x128xf32>
    %6 = arith.addf %2, %5 : vector<32x128xf32>
    %c0_8 = arith.constant 0 : index
    %c0_9 = arith.constant 0 : index
    %7 = vector.load %arg5[%c0_8, %c0_9] : memref<32x1xf32, #tpu.memory_space<vmem>>, vector<32x1xf32>
    %8 = vector.broadcast %7 : vector<32x1xf32> to vector<32x128xf32>
    %9 = arith.addf %6, %8 : vector<32x128xf32>
    %cst_10 = arith.constant 0.000000e+00 : f32
    %10 = vector.broadcast %cst_10 : f32 to vector<32x128xf32>
    %11 = arith.maximumf %9, %10 : vector<32x128xf32>
    %c0_11 = arith.constant 0 : index
    %c0_12 = arith.constant 0 : index
    %12 = vector.load %arg6[%c0_11, %c0_12] : memref<16x32xf32, #tpu.memory_space<vmem>>, vector<16x32xf32>
    %cst_13 = arith.constant dense<0.000000e+00> : vector<16x128xf32>
    %13 = tpu.matmul %12, %11, %cst_13 {dimension_numbers = #tpu.dot_dimension_numbers<[1], [0], [0], [1], [0, 0, 1, 1], [], []>} : vector<16x32xf32>, vector<32x128xf32>, vector<16x128xf32> -> vector<16x128xf32>
    %c0_14 = arith.constant 0 : index
    %c0_15 = arith.constant 0 : index
    %14 = vector.load %arg7[%c0_14, %c0_15] : memref<16x1xf32, #tpu.memory_space<vmem>>, vector<16x1xf32>
    %15 = vector.broadcast %14 : vector<16x1xf32> to vector<16x128xf32>
    %16 = arith.addf %13, %15 : vector<16x128xf32>
    %c0_16 = arith.constant 0 : index
    %c0_17 = arith.constant 0 : index
    %17 = vector.load %arg8[%c0_16, %c0_17] : memref<16x128xf32, #tpu.memory_space<vmem>>, vector<16x128xf32>
    tpu.vector_store %arg8[%c0_16, %c0_17], %16 {strides = array<i32>} : memref<16x128xf32, #tpu.memory_space<vmem>>, vector<16x128xf32>,
    return
  }
  func.func @transform_0(%arg0: i32) -> (i32, i32) {
    %c0_i32 = arith.constant 0 : i32
    %c0_i32_0 = arith.constant 0 : i32
    return %c0_i32, %arg0 : i32, i32
  }
  func.func @transform_1(%arg0: i32) -> (i32, i32) {
    %c0_i32 = arith.constant 0 : i32
    %c0_i32_0 = arith.constant 0 : i32
    return %c0_i32, %arg0 : i32, i32
  }
  func.func @transform_2(%arg0: i32) -> (i32, i32) {
    %c0_i32 = arith.constant 0 : i32
    %c0_i32_0 = arith.constant 0 : i32
    %c0_i32_1 = arith.constant 0 : i32
    return %c0_i32, %c0_i32_0 : i32, i32
  }
  func.func @transform_3(%arg0: i32) -> (i32, i32) {
    %c0_i32 = arith.constant 0 : i32
    %c0_i32_0 = arith.constant 0 : i32
    %c0_i32_1 = arith.constant 0 : i32
    return %c0_i32, %c0_i32_0 : i32, i32
  }
  func.func @transform_4(%arg0: i32) -> (i32, i32) {
    %c0_i32 = arith.constant 0 : i32
    %c0_i32_0 = arith.constant 0 : i32
    %c0_i32_1 = arith.constant 0 : i32
    return %c0_i32, %c0_i32_0 : i32, i32
  }
  func.func @transform_5(%arg0: i32) -> (i32, i32) {
    %c0_i32 = arith.constant 0 : i32
    %c0_i32_0 = arith.constant 0 : i32
    %c0_i32_1 = arith.constant 0 : i32
    return %c0_i32, %c0_i32_0 : i32, i32
  }
  func.func @transform_6(%arg0: i32) -> (i32, i32) {
    %c0_i32 = arith.constant 0 : i32
    %c0_i32_0 = arith.constant 0 : i32
    %c0_i32_1 = arith.constant 0 : i32
    return %c0_i32, %c0_i32_0 : i32, i32
  }
  func.func @transform_7(%arg0: i32) -> (i32, i32) {
    %c0_i32 = arith.constant 0 : i32
    %c0_i32_0 = arith.constant 0 : i32
    return %c0_i32, %arg0 : i32, i32
  }
}

</mosaic_0001>

<bundles_post_ra>
// kernel: decoder_forward.1
= control target key start
LH: loop header
LB: loop body
LE: loop exit
PB: predicated region body
PF: predicated region fallthrough
CT: control target
= control target key end

     0   :  { %vm36_vm0 = vcmask 64512   ;;  %v433_v3 = vmov 0   ;;  %vm277_vm1 = vcmask 261120   ;;  %s544_s1 = inlined_call_operand.vmem [shape: f32[8,128], index: 1, kind: input, shape index: {}]   ;;  %s545_s0 = inlined_call_operand.vmem [shape: f32[8,128], index: 0, kind: input, shape index: {}]   ;;  %s546_s3 = inlined_call_operand.vmem [shape: f32[32,8], index: 3, kind: input, shape index: {}]   ;;  %s547_s2 = inlined_call_operand.vmem [shape: f32[32,8], index: 2, kind: input, shape index: {}]   ;;  %s548_s4 = inlined_call_operand.vmem [shape: f32[32,1], index: 4, kind: input, shape index: {}]   ;;  %s549_s6 = inlined_call_operand.vmem [shape: f32[16,1], index: 6, kind: input, shape index: {}]   ;;  %s550_s5 = inlined_call_operand.vmem [shape: f32[16,32], index: 5, kind: input, shape index: {}]   ;;  %s551_s7 = inlined_call_operand.vmem [shape: f32[16,128], index: 7, kind: output, shape index: {}]  }
   0x1   :  { %v35_v0 = vld [vmem:[%s544_s1] sm:$0xff]  ;;  %431 = vset.pattern.permute.xlu0 %v433_v3  ;;  %432 = vset.pattern.permute.xlu1 %v433_v3  ;;  %v32_v5 = vld [vmem:[%s546_s3 + $0x8] sm:$0xff]  ;;  %v33_v7 = vld [vmem:[%s546_s3 + $0x10] sm:$0xff] }
   0x2   :  { %v30_v1 = vld [vmem:[%s545_s0] sm:$0xff]  ;;  %391 = vmatprep.subr.mxu1 %v35_v0  ;;  %v27_v6 = vld [vmem:[%s547_s2 + $0x8] sm:$0xff]  ;;  %v28_v8 = vld [vmem:[%s547_s2 + $0x10] sm:$0xff] }
   0x3   :  { %v31_v2 = vld [vmem:[%s546_s3] sm:$0xff]  ;;  %399 = vmatprep.subr.mxu0 %v30_v1  ;;  %392 = vmatpush3.msra.mxu1 %v35_v0  ;;  %v233_v10 = vld [vmem:[%s548_s4 + $0x10] sm:$0xff]  ;;  %v34_v11 = vld [vmem:[%s546_s3 + $0x18] sm:$0xff] }
   0x4   :  { %v26_v4 = vld [vmem:[%s547_s2] sm:$0xff]  ;;  %393 = vmatprep.mubr.msk.f32.mxu1 %vm36_vm0, %v31_v2  ;;  %400 = vmatpush3.msra.mxu0 %v30_v1  ;;  %v29_v12 = vld [vmem:[%s547_s2 + $0x18] sm:$0xff]  ;;  %v232_v13 = vld [vmem:[%s548_s4 + $0x8] sm:$0xff] }
   0x5   :  { %401 = vmatprep.mubr.msk.f32.mxu0 %vm36_vm0, %v26_v4  ;;  %v231_v9 = vld [vmem:[%s548_s4] sm:$0xff]  ;;  %394 = vmatmul.mubr.msk.f32.vlgmr.msra.gmra.mrb[0].mxu1 %vm36_vm0, %v32_v5  ;;  %v234_v14 = vld [vmem:[%s548_s4 + $0x18] sm:$0xff]  ;;  %v266_v16 = vld [vmem:[%s549_s6 + $0x8] sm:$0xff] }
   0x6   :  { %402 = vmatmul.mubr.msk.f32.vlgmr.msra.gmra.mrb[0].mxu0 %vm36_vm0, %v27_v6  ;;  %396 = vmatprep.mubr.msk.f32.mxu1 %vm36_vm0, %v33_v7  ;;  %v265_v15 = vld [vmem:[%s549_s6] sm:$0xff]  ;;  %v264_v44 = vld [vmem:[%s550_s5 + $0x8] sm:$0xff] }
   0x7   :  { %404 = vmatprep.mubr.msk.f32.mxu0 %vm36_vm0, %v28_v8  ;;  %237 = vperm.xlu0 %431, %v231_v9   ;;  %v263_v17 = vld [vmem:[%s550_s5] sm:$0xff] }
   0x8   :  { %247 = vperm.xlu1 %432, %v233_v10  }
   0x9   :  { %397 = vmatmul.mubr.msk.f32.gmra.mrb[2].mxu1 %vm36_vm0, %v34_v11 }
   0xa   :  { %405 = vmatmul.mubr.msk.f32.gmra.mrb[2].mxu0 %vm36_vm0, %v29_v12  ;;  %415 = vmatprep.mubr.msk.f32.mxu1 %vm277_vm1, %v263_v17 }
   0xb   :  { %242 = vperm.xlu0 %431, %v232_v13  }
   0xc   :  { %252 = vperm.xlu1 %432, %v234_v14  }
   0xf   :  { %269 = vperm.xlu0 %431, %v265_v15  }
  0x10   :  { %274 = vperm.xlu1 %432, %v266_v16  }
  0x86   :  { %v238_v18 = vpop.permute.xlu0 %237 }
  0x87   :  { %v248_v19 = vpop.permute.xlu1 %247 }
  0x8a   :  { %v243_v25 = vpop.permute.xlu0 %242 }
  0x8b   :  { %v253_v35 = vpop.permute.xlu1 %252 }
  0x8e   :  { %v270_v47 = vpop.permute.xlu0 %269 }
  0x8f   :  { %v275_v45 = vpop.permute.xlu1 %274 }
  0xd8   :  { %v395_v20 = vpop.f32.mrb[0].mxu1 }
  0xd9   :  { %v403_v21 = vpop.f32.mrb[0].mxu0  ;;  %v115_v23 = vpop.f32.mrb[1].mxu1 }
  0xda   :  { %v218_v22 = vadd.f32 %v403_v21, %v395_v20  ;;  %v212_v24 = vpop.f32.mrb[1].mxu0 }
  0xdb   :  { %v213_v26 = vadd.f32 %v212_v24, %v115_v23 }
  0xdc   :  { %v256_v27 = vadd.f32 %v243_v25, %v218_v22  ;;  %v398_v29 = vpop.f32.mrb[2].mxu1 }
  0xdd   :  { %v255_v28 = vadd.f32 %v238_v18, %v213_v26  ;;  %v406_v30 = vpop.f32.mrb[2].mxu0  ;;  %v125_v33 = vpop.f32.mrb[3].mxu1 }
  0xde   :  { %v260_v31 = vmax.f32 %v256_v27, 0.0  ;;  %v228_v32 = vadd.f32 %v406_v30, %v398_v29  ;;  %v222_v34 = vpop.f32.mrb[3].mxu0 }
  0xdf   :  { %v259_v36 = vmax.f32 %v255_v28, 0.0  ;;  %v223_v37 = vadd.f32 %v222_v34, %v125_v33 }
  0xe0   :  { %v258_v38 = vadd.f32 %v253_v35, %v228_v32 }
  0xe1   :  { %v257_v39 = vadd.f32 %v248_v19, %v223_v37  ;;  %v418_v40 = vpack.c.bf16 %v260_v31, %v259_v36 }
  0xe2   :  { %v262_v41 = vmax.f32 %v258_v38, 0.0 }
  0xe3   :  { %v261_v42 = vmax.f32 %v257_v39, 0.0  ;;  %419 = vmatprep.subr.bf16.mxu1 %v418_v40 }
  0xe4   :  { %421 = vmatpush3.bf16.msra.mxu1 %v418_v40 }
  0xe5   :  { %v422_v43 = vpack.c.bf16 %v262_v41, %v261_v42 }
  0xe7   :  { %423 = vmatprep.subr.bf16.mxu1 %v422_v43 }
  0xe8   :  { %425 = vmatpush3.bf16.msra.mxu1 %v422_v43 }
  0xeb   :  { %416 = vmatmul.mubr.msk.f32.vlgmr.msra.gmra.mrb[4].mxu1 %vm277_vm1, %v264_v44 }
 0x1be   :  { %v417_v46 = vpop.f32.mrb[4].mxu1 }
 0x1bf   :  { %v356_v48 = vadd.f32 %v417_v46, %v275_v45  ;;  %v350_v49 = vpop.f32.mrb[5].mxu1 }
 0x1c0   :  { %v351_v50 = vadd.f32 %v350_v49, %v270_v47 }
 0x1c1   :  { %360 = vst [vmem:[%s551_s7 + $0x8] sm:$0xff] %v356_v48 }
 0x1c2   :  { %359 = vst [vmem:[%s551_s7] sm:$0xff] %v351_v50 }

</bundles_post_ra>
